<compile_context>
chip_gen: v6e
topology: v6e:2x2x1
jax: 0.10.0
libtpu: 0.0.40
codegen_flags: <defaults>
</compile_context>

<pallas_src>
import jax
import jax.numpy as jnp
from jax.experimental import pallas as pl
from jax.experimental.pallas import tpu as pltpu


_TARGET_TILE_BYTES = 8 * 1024 * 1024     # per-array tile target (widest dtype)
_MIN_SPLIT_BYTES = 2 * 1024 * 1024       # slabs above this always get >= 2 blocks (v7x megacore)
_VMEM_CAP_BYTES = 56 * 1024 * 1024       # < v7x's 64 MiB physical VMEM -> headroom for Mosaic scratch
_SMALL_BYPASS_BYTES = 512 * 1024         # per input; fused XLA subtract wins below this


def _sub_kernel(l_ref, r_ref, o_ref):
    # Cast in-kernel: free on the VPU (kernel is DMA-bound), and keeps the
    # wrapper from writing full-size cast temporaries to HBM.
    out_dt = o_ref.dtype
    o_ref[...] = l_ref[...].astype(out_dt) - r_ref[...].astype(out_dt)


def _sublane_multiple(dtype):
    # sub-32-bit dtypes pack along sublanes: 8 for 4B, 16 for 2B, 32 for 1B
    itemsize = jnp.dtype(dtype).itemsize
    return {4: 8, 2: 16, 1: 32}.get(itemsize, 8)


def _choose_block_rows(rows, lane_w, sublane, max_itemsize):
    """Pick (block_rows, num_blocks) for the (rows, lane_w) slab."""
    slab_bytes = rows * lane_w * max_itemsize

    # Small slab, or too few rows to split cleanly: one full-array block
    # (block == full array dim is always a legal BlockSpec).
    if slab_bytes <= _MIN_SPLIT_BYTES or rows < 2 * sublane:
        return rows, 1

    # >= 2 blocks so dimension_semantics="parallel" can use both v7x TCs;
    # prefer an even block count so the two cores get balanced work.
    nblocks = max(2, pl.cdiv(slab_bytes, _TARGET_TILE_BYTES))
    if nblocks % 2:
        nblocks += 1
    block_rows = pl.cdiv(rows, nblocks)
    block_rows = pl.cdiv(block_rows, sublane) * sublane   # (8,128)-legal, dtype-packed
    return block_rows, pl.cdiv(rows, block_rows)           # Pallas masks the partial last block


def _pallas_sub_2d(l2, r2, rows, lane_w, out_dtype):
    dts = (l2.dtype, r2.dtype, out_dtype)
    sublane = max(_sublane_multiple(d) for d in dts)
    max_itemsize = max(jnp.dtype(d).itemsize for d in dts)
    sum_itemsize = sum(jnp.dtype(d).itemsize for d in dts)

    block_rows, nblocks = _choose_block_rows(rows, lane_w, sublane, max_itemsize)

    # 3 arrays, double-buffered (x2), plus ~50% headroom; capped for v7x VMEM.
    tile_bytes_total = block_rows * lane_w * sum_itemsize
    vmem_budget = int(min(_VMEM_CAP_BYTES, max(16 * 1024 * 1024, 3 * tile_bytes_total)))

    return pl.pallas_call(
        _sub_kernel,
        out_shape=jax.ShapeDtypeStruct((rows, lane_w), out_dtype),
        grid_spec=pltpu.PrefetchScalarGridSpec(
            num_scalar_prefetch=0,
            grid=(nblocks,),
            in_specs=[
                pl.BlockSpec((block_rows, lane_w), lambda i: (i, 0)),
                pl.BlockSpec((block_rows, lane_w), lambda i: (i, 0)),
            ],
            out_specs=pl.BlockSpec((block_rows, lane_w), lambda i: (i, 0)),
        ),
        compiler_params=pltpu.CompilerParams(
            dimension_semantics=("parallel",),   # shards the grid across v7x's 2 TCs
            vmem_limit_bytes=vmem_budget,
        ),
    )(l2, r2)


def qsubtract(x_left, x_right, *, force_pallas=False):
    """Elementwise subtraction matching torch's `x_left - x_right`."""
    x_left = jnp.asarray(x_left)
    x_right = jnp.asarray(x_right)
    out_dtype = jnp.result_type(x_left.dtype, x_right.dtype)

    # Broadcasted shapes: keep in fused XLA -- materializing broadcast copies
    # for Pallas would add a full extra HBM read+write pass per operand.
    # TODO(synk): express operand broadcasting via BlockSpec index_map (size-1 dims).
    if x_left.shape != x_right.shape:
        return (x_left - x_right).astype(out_dtype)

    orig_shape = x_left.shape
    total = x_left.size
    if total == 0:
        return (x_left - x_right).astype(out_dtype)

    in_bytes = total * max(x_left.dtype.itemsize, x_right.dtype.itemsize)
    if in_bytes < _SMALL_BYPASS_BYTES and not force_pallas:
        # pallas_call launch/DMA setup dominates; XLA fused subtract is optimal here.
        return (x_left - x_right).astype(out_dtype)

    # Widest lane dim (multiple of 128) that divides `total` exactly.
    lane_w = None
    for w in (8192, 4096, 2048, 1024, 512, 256, 128):
        if total % w == 0:
            lane_w = w
            break
    if lane_w is None:
        # Odd sizes: fused XLA subtract is already at the HBM roofline; a Pallas
        # slab + concatenated tail would only add HBM traffic.
        return (x_left - x_right).astype(out_dtype)

    rows = total // lane_w
    out2 = _pallas_sub_2d(
        jnp.ravel(x_left).reshape(rows, lane_w),
        jnp.ravel(x_right).reshape(rows, lane_w),
        rows, lane_w, out_dtype,
    )
    return out2.reshape(orig_shape)


if __name__ == "__main__":
    key = jax.random.PRNGKey(0)
    k1, k2, k3, k4, k5, k6 = jax.random.split(key, 6)

    # 1) Small NCHW feature map -- force the Pallas path to validate the kernel.
    a = jax.random.normal(k1, (2, 4, 16, 16), dtype=jnp.float32)
    b = jax.random.normal(k2, (2, 4, 16, 16), dtype=jnp.float32)
    out = qsubtract(a, b, force_pallas=True)
    jax.block_until_ready(out)
    ref = a - b
    assert out.shape == ref.shape and out.dtype == ref.dtype
    assert jnp.allclose(out, ref, atol=1e-6), "mismatch vs reference (small)"

    # 2) Larger slab: exercises the multi-block parallel grid (2 even blocks).
    c = jax.random.normal(k3, (2, 8, 256, 256), dtype=jnp.float32)
    d = jax.random.normal(k4, (2, 8, 256, 256), dtype=jnp.float32)
    out2 = qsubtract(c, d)
    jax.block_until_ready(out2)
    assert jnp.allclose(out2, c - d, atol=1e-6), "mismatch vs reference (tiled)"

    # 3) Mixed dtypes, same shape: promotion/cast happens inside the kernel.
    e = jax.random.normal(k5, (2, 4, 16, 16), dtype=jnp.bfloat16)
    f = jax.random.normal(k6, (2, 4, 16, 16), dtype=jnp.float32)
    out3 = qsubtract(e, f, force_pallas=True)
    jax.block_until_ready(out3)
    assert out3.dtype == jnp.float32
    assert jnp.allclose(out3, e.astype(jnp.float32) - f, atol=1e-2), "mismatch (mixed dtype)"

    # 4) Odd size not divisible by 128 -> fused XLA fallback (same semantics).
    g = jax.random.normal(k1, (3, 5, 7, 11), dtype=jnp.float32)
    h = jax.random.normal(k2, (3, 5, 7, 11), dtype=jnp.float32)
    out4 = qsubtract(g, h)
    jax.block_until_ready(out4)
    assert jnp.allclose(out4, g - h, atol=1e-6), "mismatch vs reference (odd)"

    print("KERNEL_OK")
</pallas_src>

<mosaic_0001>
module attributes {stable_mosaic.version = 11 : i64} {
  func.func @_sub_kernel(%arg0: i32, %arg1: memref<1x2048xf32, #tpu.memory_space<vmem>>, %arg2: memref<1x2048xf32, #tpu.memory_space<vmem>>, %arg3: memref<1x2048xf32, #tpu.memory_space<vmem>>) attributes {dimension_semantics = [#tpu.dimension_semantics<parallel>], iteration_bounds = array<i64: 1>, scalar_prefetch = 0 : i64, scratch_operands = 0 : i64, tpu.core_type = #tpu.core_type<tc>, window_params = [{transform_indices = @transform_0, window_bounds = array<i64: 1, 2048>}, {transform_indices = @transform_1, window_bounds = array<i64: 1, 2048>}, {transform_indices = @transform_2, window_bounds = array<i64: 1, 2048>}]} {
    %c0 = arith.constant 0 : index
    %c0_0 = arith.constant 0 : index
    %0 = vector.load %arg1[%c0, %c0_0] : memref<1x2048xf32, #tpu.memory_space<vmem>>, vector<1x2048xf32>
    %c0_1 = arith.constant 0 : index
    %c0_2 = arith.constant 0 : index
    %1 = vector.load %arg2[%c0_1, %c0_2] : memref<1x2048xf32, #tpu.memory_space<vmem>>, vector<1x2048xf32>
    %2 = arith.subf %0, %1 : vector<1x2048xf32>
    %c0_3 = arith.constant 0 : index
    %c0_4 = arith.constant 0 : index
    %3 = vector.load %arg3[%c0_3, %c0_4] : memref<1x2048xf32, #tpu.memory_space<vmem>>, vector<1x2048xf32>
    tpu.vector_store %arg3[%c0_3, %c0_4], %2 {strides = array<i32>} : memref<1x2048xf32, #tpu.memory_space<vmem>>, vector<1x2048xf32>,
    return
  }
  func.func @transform_0(%arg0: i32) -> (i32, i32) {
    %c0_i32 = arith.constant 0 : i32
    %c0_i32_0 = arith.constant 0 : i32
    return %arg0, %c0_i32 : i32, i32
  }
  func.func @transform_1(%arg0: i32) -> (i32, i32) {
    %c0_i32 = arith.constant 0 : i32
    %c0_i32_0 = arith.constant 0 : i32
    return %arg0, %c0_i32 : i32, i32
  }
  func.func @transform_2(%arg0: i32) -> (i32, i32) {
    %c0_i32 = arith.constant 0 : i32
    %c0_i32_0 = arith.constant 0 : i32
    return %arg0, %c0_i32 : i32, i32
  }
}

</mosaic_0001>

<bundles_post_ra>
// kernel: tpu_custom_call.1
= control target key start
LH: loop header
LB: loop body
LE: loop exit
PB: predicated region body
PF: predicated region fallthrough
CT: control target
= control target key end

     0   :  { %7 = vsyncpa [#allocation3], 0  ;;  %s156_s0 = inlined_call_operand.hbm [shape: f32[1,2048], index: 0, kind: input, shape index: {}]   ;;  %s157_s1 = inlined_call_operand.hbm [shape: f32[1,2048], index: 1, kind: input, shape index: {}]   ;;  %s158_s2 = inlined_call_operand.hbm [shape: f32[1,2048], index: 2, kind: output, shape index: {}]  }
   0x1   :  { %8 = vsyncpa [#allocation6], 0 }
   0x2   :  { %9 = vsyncpa [#allocation4], 0  ;;  %s129_s9 = smov [#allocation2]   ;;  %s130_s11 = smov [#allocation5]  }
   0x3   :  { %s16_s10 = sshll.u32 %s129_s9, 4  ;;  %s26_s12 = sshll.u32 %s130_s11, 4  ;;  %s17_s10 = int_to_ptr.vmem [resolvable:$true] %s16_s10  ;;  %s27_s12 = int_to_ptr.vmem [resolvable:$true] %s26_s12 }
   0x4   :  { %s71_s13 = scalar_lea.vmem %s17_s10, 256  ;;  %p76_p1 = scmp.lt.s32.totalorder %s17_s10, %s17_s10 }
   0x5   :  { %p72_p0 = scmp.ne.s32.totalorder %s17_s10, %s71_s13  ;;  %p77_p2 = scmp.lt.s32.totalorder %s71_s13, %s71_s13 }
   0x7   :  { %p78_p3 = por %p77_p2, %p76_p1 }
   0x9   :  { %p79_p4 = pnand %p78_p3, %p72_p0 }
   0xb   :  { %82 = shalt.err (!%p79_p4)
}
   0xc   :  { %19 = dma.hbm_to_vmem [thread:$0]  %s156_s0, 256, %s17_s10, [#allocation3]  }
   0xd   :  { %s91_s16 = scalar_lea.vmem %s27_s12, 256  ;;  %p96_p6 = scmp.lt.s32.totalorder %s27_s12, %s27_s12 }
   0xe   :  { %p92_p5 = scmp.ne.s32.totalorder %s27_s12, %s91_s16  ;;  %p97_p7 = scmp.lt.s32.totalorder %s91_s16, %s91_s16 }
  0x10   :  { %p98_p8 = por %p97_p7, %p96_p6 }
  0x12   :  { %p99_p9 = pnand %p98_p8, %p92_p5 }
  0x14   :  { %102 = shalt.err (!%p99_p9)
}
  0x15   :  { %29 = dma.hbm_to_vmem [thread:$0]  %s157_s1, 256, %s27_s12, [#allocation6]  }
  0x16   :  { %123 = dma.done.wait [#allocation3], 256  }
  0x17   :  { %124 = vsyncadd [#allocation3], 4294967040 }
  0x18   :  { %125 = dma.done.wait [#allocation6], 256  }
  0x19   :  { %126 = vsyncadd [#allocation6], 4294967040  ;;  %s131_s19 = smov [#allocation7]   ;;  %v36_v0 = vld [vmem:[#allocation2] sm:$0xff]  ;;  %v38_v1 = vld [vmem:[#allocation5] sm:$0xff] }
  0x1a   :  { %s50_s20 = sshll.u32 %s131_s19, 4  ;;  %v37_v2 = vld [vmem:[#allocation2 + $0x8] sm:$0xff]  ;;  %v40_v3 = vsub.f32 %v36_v0, %v38_v1  ;;  %v39_v4 = vld [vmem:[#allocation5 + $0x8] sm:$0xff]  ;;  %s51_s20 = int_to_ptr.vmem [resolvable:$true] %s50_s20 }
  0x1b   :  { %v41_v5 = vsub.f32 %v37_v2, %v39_v4  ;;  %s103_s0 = scalar_lea.vmem %s51_s20, 256  ;;  %p108_p11 = scmp.lt.s32.totalorder %s51_s20, %s51_s20 }
  0x1c   :  { %42 = vst [vmem:[#allocation7] sm:$0xff] %v40_v3  ;;  %p104_p10 = scmp.ne.s32.totalorder %s51_s20, %s103_s0  ;;  %p109_p12 = scmp.lt.s32.totalorder %s103_s0, %s103_s0 }
  0x1d   :  { %43 = vst [vmem:[#allocation7 + $0x8] sm:$0xff] %v41_v5 }
  0x1e   :  { %p110_p13 = por %p109_p12, %p108_p11 }
  0x20   :  { %p111_p0 = pnand %p110_p13, %p104_p10 }
  0x22   :  { %114 = shalt.err (!%p111_p0)
}
  0x23   :  { %53 = dma.vmem_to_hbm [thread:$0]  %s51_s20, 256, %s158_s2, [#allocation4]  }
  0x24   :  { %127 = dma.done.wait [#allocation4], 256  }
  0x25   :  { %128 = vsyncadd [#allocation4], 4294967040 }
  0x26   :  { %57 = vsyncpa [#allocation3], 1 }
  0x27   :  { %58 = vsyncpa [#allocation6], 1 }
  0x28   :  { %59 = vsyncpa [#allocation4], 1 }

</bundles_post_ra>
